<compile_context>
chip_gen: v6e
topology: v6e:2x2x1
jax: 0.10.0
libtpu: 0.0.40
codegen_flags: <defaults>
</compile_context>

<pallas_src>
import jax
import jax.numpy as jnp
from jax.experimental import pallas as pl
from jax.experimental.pallas import tpu as pltpu


def _mlp_kernel(x_ref,
                w1_ref, d1_ref,
                w2_ref, d2_ref,
                w3_ref, d3_ref,
                w4_ref, b4_ref,
                o_ref):
    """One batch tile. x_ref: [IN, TB] (feature-major); activations stay [feat, TB]."""
    # Layer 1: [H1, IN] @ [IN, TB] -> [H1, TB]  (x/W1 may be bf16; f32 accumulation).
    h = jnp.dot(w1_ref[...], x_ref[...], preferred_element_type=jnp.float32)
    h = jnp.maximum(h + d1_ref[...], 0.0)          # folded BN + ReLU (Dropout = identity)

    # Layer 2: [H2, H1] @ [H1, TB] -> [H2, TB]   (all f32, no inter-layer casts)
    h = jnp.dot(w2_ref[...], h, preferred_element_type=jnp.float32)
    h = jnp.maximum(h + d2_ref[...], 0.0)

    # Layer 3: [H3, H2] @ [H2, TB] -> [H3, TB]
    h = jnp.dot(w3_ref[...], h, preferred_element_type=jnp.float32)
    h = jnp.maximum(h + d3_ref[...], 0.0)

    # Head Linear(H3, 1): VPU multiply + sublane (XLU) reduce -> lane-dense [1, TB].
    z = jnp.sum(h * w4_ref[...], axis=0, keepdims=True) + b4_ref[...]
    o_ref[...] = jax.nn.sigmoid(z)


def _round_up(n, m):
    return ((n + m - 1) // m) * m


def _pick_batch_tile(block_b, batch, in_features, x_itemsize, hidden_total,
                     vmem_budget_bytes=20 * 1024 * 1024):
    """Largest multiple-of-128 batch tile <= block_b whose VMEM footprint fits the budget
    (keeps the same code safe on v7x's halved VMEM as well as v5e/v6e)."""
    tb = min(block_b, _round_up(max(batch, 1), 128))
    tb = max(128, _round_up(tb, 128))
    # Per batch-row bytes: double-buffered x tile (sublane-padded features) +
    # f32 intermediates for all hidden layers + the (1, TB) output tile.
    in_pad = _round_up(in_features, 32)
    per_row = 2 * in_pad * x_itemsize + (hidden_total + 1) * 4
    while tb > 128 and tb * per_row > vmem_budget_bytes:
        tb -= 128
    return tb


def cancer_nn_forward(x, params, *, input_dtype=jnp.bfloat16, block_b=4096):
    """Eval-mode forward. x: [B, input_size] float32 -> [B, 1] float32 probabilities.

    input_dtype controls only the streamed x and W1 (the batch-scaling HBM traffic);
    W2/W3, biases, activations and accumulation are always float32.
    """
    B, in_features = x.shape
    eps = 1e-5

    # Fold eval-mode BatchNorm into the preceding Linear (PyTorch layout W: [out, in]).
    def fold(i, dtype):
        w, b = params[f"w{i}"], params[f"b{i}"]
        g, beta = params[f"bn{i}_g"], params[f"bn{i}_b"]
        m, v = params[f"bn{i}_m"], params[f"bn{i}_v"]
        a = g / jnp.sqrt(v + eps)
        w_f = (a[:, None] * w).astype(dtype)                          # [out, in]
        d = (a * b + beta - m * a)[:, None].astype(jnp.float32)      # [out, 1]
        return w_f, d

    w1, d1 = fold(1, input_dtype)      # only W1 follows the streamed-input dtype
    w2, d2 = fold(2, jnp.float32)
    w3, d3 = fold(3, jnp.float32)
    w4 = params["w4"].reshape(-1, 1).astype(jnp.float32)             # [H3, 1]
    b4 = params["b4"].reshape(1, 1).astype(jnp.float32)              # [1, 1]
    h1, h2, h3 = w1.shape[0], w2.shape[0], w3.shape[0]

    x_itemsize = jnp.dtype(input_dtype).itemsize
    tb = _pick_batch_tile(block_b, B, in_features, x_itemsize, h1 + h2 + h3)
    b_pad = _round_up(B, tb)

    # Feature-major, lane-dense streamed input: [in_features, b_pad].
    xp = x.astype(input_dtype).T
    if b_pad != B:
        xp = jnp.pad(xp, ((0, 0), (0, b_pad - B)))
    grid = (b_pad // tb,)

    def resident(arr):  # same block every grid step -> parameter stays in VMEM
        return pl.BlockSpec(arr.shape, lambda i: (0, 0))

    in_specs = [
        # Streamed x over the batch (lane-dense tile, long contiguous HBM rows).
        # If the DMA is still exposed at large tb, add pipeline_mode=pl.Buffered(3).
        pl.BlockSpec((in_features, tb), lambda i: (0, i)),
        resident(w1), resident(d1),
        resident(w2), resident(d2),
        resident(w3), resident(d3),
        resident(w4), resident(b4),
    ]
    out_specs = pl.BlockSpec((1, tb), lambda i: (0, i))       # lane-dense output tile

    param_bytes = sum(int(a.size) * a.dtype.itemsize
                      for a in (w1, d1, w2, d2, w3, d3, w4, b4))
    cost = pl.CostEstimate(
        flops=int(2 * b_pad * (in_features * h1 + h1 * h2 + h2 * h3 + h3)),
        transcendentals=int(b_pad),
        bytes_accessed=int(b_pad * in_features * x_itemsize + param_bytes + b_pad * 4),
    )

    out = pl.pallas_call(
        _mlp_kernel,
        out_shape=jax.ShapeDtypeStruct((1, b_pad), jnp.float32),
        grid=grid,
        in_specs=in_specs,
        out_specs=out_specs,
        compiler_params=pltpu.CompilerParams(
            dimension_semantics=("parallel",),
            vmem_limit_bytes=32 * 1024 * 1024,
        ),
        cost_estimate=cost,
    )(xp, w1, d1, w2, d2, w3, d3, w4, b4)

    return out[0, :B].reshape(B, 1)


def init_params(key, input_size, hidden_sizes=(128, 64, 32)):
    """Deterministic synthetic parameters in PyTorch layout (Linear weight: [out, in])."""
    sizes = [input_size] + list(hidden_sizes)
    keys = iter(jax.random.split(key, 6 * len(hidden_sizes) + 2))
    params = {}
    for i, (fan_in, fan_out) in enumerate(zip(sizes[:-1], sizes[1:]), start=1):
        bound = 1.0 / (fan_in ** 0.5)
        params[f"w{i}"] = jax.random.uniform(next(keys), (fan_out, fan_in),
                                             jnp.float32, -bound, bound)
        params[f"b{i}"] = jax.random.uniform(next(keys), (fan_out,),
                                             jnp.float32, -bound, bound)
        # Non-trivial BN state so the folding path is actually exercised.
        params[f"bn{i}_g"] = jax.random.uniform(next(keys), (fan_out,), jnp.float32, 0.5, 1.5)
        params[f"bn{i}_b"] = 0.1 * jax.random.normal(next(keys), (fan_out,), jnp.float32)
        params[f"bn{i}_m"] = 0.1 * jax.random.normal(next(keys), (fan_out,), jnp.float32)
        params[f"bn{i}_v"] = jax.random.uniform(next(keys), (fan_out,), jnp.float32, 0.5, 1.5)
    fan_in = sizes[-1]
    bound = 1.0 / (fan_in ** 0.5)
    params["w4"] = jax.random.uniform(next(keys), (1, fan_in), jnp.float32, -bound, bound)
    params["b4"] = jax.random.uniform(next(keys), (1,), jnp.float32, -bound, bound)
    return params


def reference_forward(x, params):
    """Pure-JAX eval-mode reference (PyTorch semantics)."""
    eps = 1e-5
    h = x
    for i in (1, 2, 3):
        h = h @ params[f"w{i}"].T + params[f"b{i}"]
        a = params[f"bn{i}_g"] / jnp.sqrt(params[f"bn{i}_v"] + eps)
        h = jnp.maximum((h - params[f"bn{i}_m"]) * a + params[f"bn{i}_b"], 0.0)
    z = h @ params["w4"].T + params["b4"]
    return jax.nn.sigmoid(z)


if __name__ == "__main__":
    key = jax.random.PRNGKey(0)
    k_params, k_x = jax.random.split(key)

    input_size = 30   # e.g. Wisconsin breast-cancer feature count
    batch = 8

    params = init_params(k_params, input_size)
    x = jax.random.normal(k_x, (batch, input_size), jnp.float32)

    ref = reference_forward(x, params)

    # f32-input path (matches PyTorch eval-mode numerics).
    out_f32 = jax.block_until_ready(
        cancer_nn_forward(x, params, input_dtype=jnp.float32))
    assert out_f32.shape == (batch, 1)
    assert jnp.allclose(out_f32, ref, atol=1e-4, rtol=1e-4), \
        float(jnp.max(jnp.abs(out_f32 - ref)))

    # Default bf16-streamed-input path (halves batch-scaling HBM traffic; W2/W3 and all
    # activations stay f32, MXU accumulates in f32).
    out_bf16 = jax.block_until_ready(cancer_nn_forward(x, params))
    assert out_bf16.shape == (batch, 1)
    assert jnp.allclose(out_bf16, ref, atol=5e-2), \
        float(jnp.max(jnp.abs(out_bf16 - ref)))

    print("KERNEL_OK")
</pallas_src>

<mosaic_0001>
module attributes {stable_mosaic.version = 11 : i64} {
  func.func @_mlp_kernel(%arg0: i32, %arg1: memref<30x128xf32, #tpu.memory_space<vmem>>, %arg2: memref<128x30xf32, #tpu.memory_space<vmem>>, %arg3: memref<128x1xf32, #tpu.memory_space<vmem>>, %arg4: memref<64x128xf32, #tpu.memory_space<vmem>>, %arg5: memref<64x1xf32, #tpu.memory_space<vmem>>, %arg6: memref<32x64xf32, #tpu.memory_space<vmem>>, %arg7: memref<32x1xf32, #tpu.memory_space<vmem>>, %arg8: memref<32x1xf32, #tpu.memory_space<vmem>>, %arg9: memref<1x1xf32, #tpu.memory_space<vmem>>, %arg10: memref<1x128xf32, #tpu.memory_space<vmem>>) attributes {dimension_semantics = [#tpu.dimension_semantics<parallel>], iteration_bounds = array<i64: 1>, scalar_prefetch = 0 : i64, scratch_operands = 0 : i64, tpu.core_type = #tpu.core_type<tc>, window_params = [{transform_indices = @transform_0, window_bounds = array<i64: 30, 128>}, {pipeline_mode = #tpu.pipeline_mode<synchronous>, transform_indices = @transform_1, window_bounds = array<i64: 128, 30>}, {pipeline_mode = #tpu.pipeline_mode<synchronous>, transform_indices = @transform_2, window_bounds = array<i64: 128, 1>}, {pipeline_mode = #tpu.pipeline_mode<synchronous>, transform_indices = @transform_3, window_bounds = array<i64: 64, 128>}, {pipeline_mode = #tpu.pipeline_mode<synchronous>, transform_indices = @transform_4, window_bounds = array<i64: 64, 1>}, {pipeline_mode = #tpu.pipeline_mode<synchronous>, transform_indices = @transform_5, window_bounds = array<i64: 32, 64>}, {pipeline_mode = #tpu.pipeline_mode<synchronous>, transform_indices = @transform_6, window_bounds = array<i64: 32, 1>}, {pipeline_mode = #tpu.pipeline_mode<synchronous>, transform_indices = @transform_7, window_bounds = array<i64: 32, 1>}, {pipeline_mode = #tpu.pipeline_mode<synchronous>, transform_indices = @transform_8, window_bounds = array<i64: 1, 1>}, {transform_indices = @transform_9, window_bounds = array<i64: 1, 128>}]} {
    %c0 = arith.constant 0 : index
    %c0_0 = arith.constant 0 : index
    %0 = vector.load %arg2[%c0, %c0_0] : memref<128x30xf32, #tpu.memory_space<vmem>>, vector<128x30xf32>
    %c0_1 = arith.constant 0 : index
    %c0_2 = arith.constant 0 : index
    %1 = vector.load %arg1[%c0_1, %c0_2] : memref<30x128xf32, #tpu.memory_space<vmem>>, vector<30x128xf32>
    %cst = arith.constant dense<0.000000e+00> : vector<128x128xf32>
    %2 = tpu.matmul %0, %1, %cst {dimension_numbers = #tpu.dot_dimension_numbers<[1], [0], [0], [1], [0, 0, 1, 1], [], []>} : vector<128x30xf32>, vector<30x128xf32>, vector<128x128xf32> -> vector<128x128xf32>
    %c0_3 = arith.constant 0 : index
    %c0_4 = arith.constant 0 : index
    %3 = vector.load %arg3[%c0_3, %c0_4] : memref<128x1xf32, #tpu.memory_space<vmem>>, vector<128x1xf32>
    %4 = vector.broadcast %3 : vector<128x1xf32> to vector<128x128xf32>
    %5 = arith.addf %2, %4 : vector<128x128xf32>
    %cst_5 = arith.constant 0.000000e+00 : f32
    %6 = vector.broadcast %cst_5 : f32 to vector<128x128xf32>
    %7 = arith.maximumf %5, %6 : vector<128x128xf32>
    %c0_6 = arith.constant 0 : index
    %c0_7 = arith.constant 0 : index
    %8 = vector.load %arg4[%c0_6, %c0_7] : memref<64x128xf32, #tpu.memory_space<vmem>>, vector<64x128xf32>
    %cst_8 = arith.constant dense<0.000000e+00> : vector<64x128xf32>
    %9 = tpu.matmul %8, %7, %cst_8 {dimension_numbers = #tpu.dot_dimension_numbers<[1], [0], [0], [1], [0, 0, 1, 1], [], []>} : vector<64x128xf32>, vector<128x128xf32>, vector<64x128xf32> -> vector<64x128xf32>
    %c0_9 = arith.constant 0 : index
    %c0_10 = arith.constant 0 : index
    %10 = vector.load %arg5[%c0_9, %c0_10] : memref<64x1xf32, #tpu.memory_space<vmem>>, vector<64x1xf32>
    %11 = vector.broadcast %10 : vector<64x1xf32> to vector<64x128xf32>
    %12 = arith.addf %9, %11 : vector<64x128xf32>
    %cst_11 = arith.constant 0.000000e+00 : f32
    %13 = vector.broadcast %cst_11 : f32 to vector<64x128xf32>
    %14 = arith.maximumf %12, %13 : vector<64x128xf32>
    %c0_12 = arith.constant 0 : index
    %c0_13 = arith.constant 0 : index
    %15 = vector.load %arg6[%c0_12, %c0_13] : memref<32x64xf32, #tpu.memory_space<vmem>>, vector<32x64xf32>
    %cst_14 = arith.constant dense<0.000000e+00> : vector<32x128xf32>
    %16 = tpu.matmul %15, %14, %cst_14 {dimension_numbers = #tpu.dot_dimension_numbers<[1], [0], [0], [1], [0, 0, 1, 1], [], []>} : vector<32x64xf32>, vector<64x128xf32>, vector<32x128xf32> -> vector<32x128xf32>
    %c0_15 = arith.constant 0 : index
    %c0_16 = arith.constant 0 : index
    %17 = vector.load %arg7[%c0_15, %c0_16] : memref<32x1xf32, #tpu.memory_space<vmem>>, vector<32x1xf32>
    %18 = vector.broadcast %17 : vector<32x1xf32> to vector<32x128xf32>
    %19 = arith.addf %16, %18 : vector<32x128xf32>
    %cst_17 = arith.constant 0.000000e+00 : f32
    %20 = vector.broadcast %cst_17 : f32 to vector<32x128xf32>
    %21 = arith.maximumf %19, %20 : vector<32x128xf32>
    %c0_18 = arith.constant 0 : index
    %c0_19 = arith.constant 0 : index
    %22 = vector.load %arg8[%c0_18, %c0_19] : memref<32x1xf32, #tpu.memory_space<vmem>>, vector<32x1xf32>
    %23 = vector.broadcast %22 : vector<32x1xf32> to vector<32x128xf32>
    %24 = arith.mulf %21, %23 : vector<32x128xf32>
    %cst_20 = arith.constant dense<0.000000e+00> : vector<128xf32>
    %25 = vector.multi_reduction <add>, %24, %cst_20 [0] : vector<32x128xf32> to vector<128xf32>
    %26 = vector.shape_cast %25 : vector<128xf32> to vector<1x128xf32>
    %c0_21 = arith.constant 0 : index
    %c0_22 = arith.constant 0 : index
    %27 = vector.load %arg9[%c0_21, %c0_22] : memref<1x1xf32, #tpu.memory_space<vmem>>, vector<1x1xf32>
    %28 = vector.broadcast %27 : vector<1x1xf32> to vector<1x128xf32>
    %29 = arith.addf %26, %28 : vector<1x128xf32>
    %30 = arith.negf %29 : vector<1x128xf32>
    %31 = math.exp %30 : vector<1x128xf32>
    %cst_23 = arith.constant 1.000000e+00 : f32
    %32 = vector.broadcast %cst_23 : f32 to vector<1x128xf32>
    %33 = arith.addf %32, %31 : vector<1x128xf32>
    %34 = arith.divf %32, %33 : vector<1x128xf32>
    %c0_24 = arith.constant 0 : index
    %c0_25 = arith.constant 0 : index
    %35 = vector.load %arg10[%c0_24, %c0_25] : memref<1x128xf32, #tpu.memory_space<vmem>>, vector<1x128xf32>
    tpu.vector_store %arg10[%c0_24, %c0_25], %34 {strides = array<i32>} : memref<1x128xf32, #tpu.memory_space<vmem>>, vector<1x128xf32>,
    return
  }
  func.func @transform_0(%arg0: i32) -> (i32, i32) {
    %c0_i32 = arith.constant 0 : i32
    %c0_i32_0 = arith.constant 0 : i32
    return %c0_i32, %arg0 : i32, i32
  }
  func.func @transform_1(%arg0: i32) -> (i32, i32) {
    %c0_i32 = arith.constant 0 : i32
    %c0_i32_0 = arith.constant 0 : i32
    %c0_i32_1 = arith.constant 0 : i32
    return %c0_i32, %c0_i32_0 : i32, i32
  }
  func.func @transform_2(%arg0: i32) -> (i32, i32) {
    %c0_i32 = arith.constant 0 : i32
    %c0_i32_0 = arith.constant 0 : i32
    %c0_i32_1 = arith.constant 0 : i32
    return %c0_i32, %c0_i32_0 : i32, i32
  }
  func.func @transform_3(%arg0: i32) -> (i32, i32) {
    %c0_i32 = arith.constant 0 : i32
    %c0_i32_0 = arith.constant 0 : i32
    %c0_i32_1 = arith.constant 0 : i32
    return %c0_i32, %c0_i32_0 : i32, i32
  }
  func.func @transform_4(%arg0: i32) -> (i32, i32) {
    %c0_i32 = arith.constant 0 : i32
    %c0_i32_0 = arith.constant 0 : i32
    %c0_i32_1 = arith.constant 0 : i32
    return %c0_i32, %c0_i32_0 : i32, i32
  }
  func.func @transform_5(%arg0: i32) -> (i32, i32) {
    %c0_i32 = arith.constant 0 : i32
    %c0_i32_0 = arith.constant 0 : i32
    %c0_i32_1 = arith.constant 0 : i32
    return %c0_i32, %c0_i32_0 : i32, i32
  }
  func.func @transform_6(%arg0: i32) -> (i32, i32) {
    %c0_i32 = arith.constant 0 : i32
    %c0_i32_0 = arith.constant 0 : i32
    %c0_i32_1 = arith.constant 0 : i32
    return %c0_i32, %c0_i32_0 : i32, i32
  }
  func.func @transform_7(%arg0: i32) -> (i32, i32) {
    %c0_i32 = arith.constant 0 : i32
    %c0_i32_0 = arith.constant 0 : i32
    %c0_i32_1 = arith.constant 0 : i32
    return %c0_i32, %c0_i32_0 : i32, i32
  }
  func.func @transform_8(%arg0: i32) -> (i32, i32) {
    %c0_i32 = arith.constant 0 : i32
    %c0_i32_0 = arith.constant 0 : i32
    %c0_i32_1 = arith.constant 0 : i32
    return %c0_i32, %c0_i32_0 : i32, i32
  }
  func.func @transform_9(%arg0: i32) -> (i32, i32) {
    %c0_i32 = arith.constant 0 : i32
    %c0_i32_0 = arith.constant 0 : i32
    return %c0_i32, %arg0 : i32, i32
  }
}

</mosaic_0001>

<bundles_post_ra>
// kernel: tpu_custom_call.1
= control target key start
LH: loop header
LB: loop body
LE: loop exit
PB: predicated region body
PF: predicated region fallthrough
CT: control target
= control target key end

     0   :  { %s1221_s0 = inlined_call_operand.vmem [shape: f32[30,128], index: 0, kind: input, shape index: {}]   ;;  %s1222_s1 = inlined_call_operand.vmem [shape: f32[128,30], index: 1, kind: input, shape index: {}]   ;;  %s1223_s2 = inlined_call_operand.vmem [shape: f32[128,1], index: 2, kind: input, shape index: {}]   ;;  %s1224_s3 = inlined_call_operand.vmem [shape: f32[64,128], index: 3, kind: input, shape index: {}]   ;;  %s1225_s4 = inlined_call_operand.vmem [shape: f32[64,1], index: 4, kind: input, shape index: {}]   ;;  %s1226_s5 = inlined_call_operand.vmem [shape: f32[32,64], index: 5, kind: input, shape index: {}]   ;;  %s1227_s6 = inlined_call_operand.vmem [shape: f32[32,1], index: 6, kind: input, shape index: {}]   ;;  %s1228_s7 = inlined_call_operand.vmem [shape: f32[32,1], index: 7, kind: input, shape index: {}]   ;;  %s1229_s8 = inlined_call_operand.<no memory space> [shape: f32[1,1], index: 8, kind: input, shape index: {}]   ;;  %s1230_s9 = inlined_call_operand.hbm [shape: f32[1,128], index: 9, kind: output, shape index: {}]  }
   0x1   :  { %v14_v0 = vstv %s1229_s8 }
   0x2   :  { %15 = vst [vmem:[#allocation2] sm:$0x1] %v14_v0 }
   0x3   :  { %v54_v1 = vld [vmem:[%s1221_s0 + $0x18] sm:$0x3f]  ;;  %vm200_vm0 = vcmask 1045504   ;;  %v53_v2 = vld [vmem:[%s1221_s0 + $0x10] sm:$0xff]  ;;  %vm151_vm1 = vcmask 244736   ;;  %v35_v3 = vld [vmem:[%s1222_s1] sm:$0xff] }
   0x4   :  { %811 = vmatprep.subr.msk.mxu0 %vm200_vm0, %v54_v1  ;;  %v52_v4 = vld [vmem:[%s1221_s0 + $0x8] sm:$0xff]  ;;  %819 = vmatprep.mubr.msk.f32.mxu0 %vm151_vm1, %v35_v3  ;;  %v939_v5 = vmov 0   ;;  %v51_v6 = vld [vmem:[%s1221_s0] sm:$0xff]  ;;  %v70_v8 = vld [vmem:[%s1223_s2 + $0x78] sm:$0xff] }
   0x5   :  { %812 = vmatpush3.msk.msra.mxu0 %vm200_vm0, %v54_v1  ;;  %911 = vset.pattern.permute.xlu0 %v939_v5  ;;  %v36_v7 = vld [vmem:[%s1222_s1 + $0x8] sm:$0xff]  ;;  %v37_v9 = vld [vmem:[%s1222_s1 + $0x10] sm:$0xff]  ;;  %v67_v12 = vld [vmem:[%s1223_s2 + $0x60] sm:$0xff] }
   0x6   :  { %813 = vmatprep.subr.mxu0 %v53_v2  ;;  %912 = vset.pattern.permute.xlu1 %v939_v5  ;;  %v68_v10 = vld [vmem:[%s1223_s2 + $0x68] sm:$0xff]  ;;  %v69_v11 = vld [vmem:[%s1223_s2 + $0x70] sm:$0xff]  ;;  %v38_v13 = vld [vmem:[%s1222_s1 + $0x18] sm:$0xff] }
   0x7   :  { %814 = vmatpush3.msra.mxu0 %v53_v2  ;;  %148 = vperm.xlu0 %911, %v70_v8   ;;  %v39_v14 = vld [vmem:[%s1222_s1 + $0x20] sm:$0xff]  ;;  %v66_v15 = vld [vmem:[%s1223_s2 + $0x58] sm:$0xff]  ;;  %v65_v16 = vld [vmem:[%s1223_s2 + $0x50] sm:$0xff] }
   0x8   :  { %815 = vmatprep.subr.mxu0 %v52_v4  ;;  %138 = vperm.xlu1 %912, %v68_v10   ;;  %v40_v17 = vld [vmem:[%s1222_s1 + $0x28] sm:$0xff]  ;;  %v41_v18 = vld [vmem:[%s1222_s1 + $0x30] sm:$0xff]  ;;  %v63_v20 = vld [vmem:[%s1223_s2 + $0x40] sm:$0xff] }
   0x9   :  { %816 = vmatpush3.msra.mxu0 %v52_v4  ;;  %v64_v19 = vld [vmem:[%s1223_s2 + $0x48] sm:$0xff] }
   0xa   :  { %817 = vmatprep.subr.mxu0 %v51_v6 }
   0xb   :  { %818 = vmatpush3.msra.mxu0 %v51_v6  ;;  %143 = vperm.xlu0 %911, %v69_v11  }
   0xc   :  { %820 = vmatmul.mubr.msk.f32.vlgmr.msra.gmra.mxu0 %vm151_vm1, %v36_v7  ;;  %133 = vperm.xlu1 %912, %v67_v12  }
   0xd   :  { %822 = vmatprep.mubr.msk.f32.mxu0 %vm151_vm1, %v37_v9 }
   0xf   :  { %128 = vperm.xlu0 %911, %v66_v15  }
  0x10   :  { %823 = vmatmul.mubr.msk.f32.gmra.mxu0 %vm151_vm1, %v38_v13  ;;  %123 = vperm.xlu1 %912, %v65_v16  }
  0x11   :  { %825 = vmatprep.mubr.msk.f32.mxu0 %vm151_vm1, %v39_v14 }
  0x14   :  { %826 = vmatmul.mubr.msk.f32.gmra.mxu0 %vm151_vm1, %v40_v17 }
  0x15   :  { %16 = vsyncpa [#allocation4], 0  ;;  %828 = vmatprep.mubr.msk.f32.mxu0 %vm151_vm1, %v41_v18  ;;  %v42_v21 = vld [vmem:[%s1222_s1 + $0x38] sm:$0xff]  ;;  %v43_v22 = vld [vmem:[%s1222_s1 + $0x40] sm:$0xff]  ;;  %118 = vperm.xlu0 %911, %v64_v19   ;;  %vm562_vm2 = vcmask 523264  }
  0x16   :  { %v62_v23 = vld [vmem:[%s1223_s2 + $0x38] sm:$0xff]  ;;  %113 = vperm.xlu1 %912, %v63_v20   ;;  %v61_v24 = vld [vmem:[%s1223_s2 + $0x30] sm:$0xff]  ;;  %v44_v25 = vld [vmem:[%s1222_s1 + $0x48] sm:$0xff] }
  0x17   :  { %v45_v26 = vld [vmem:[%s1222_s1 + $0x50] sm:$0xff]  ;;  %v60_v27 = vld [vmem:[%s1223_s2 + $0x28] sm:$0xff]  ;;  %v59_v28 = vld [vmem:[%s1223_s2 + $0x20] sm:$0xff] }
  0x18   :  { %829 = vmatmul.mubr.msk.f32.gmra.mxu0 %vm151_vm1, %v42_v21  ;;  %v46_v29 = vld [vmem:[%s1222_s1 + $0x58] sm:$0xff]  ;;  %v47_v30 = vld [vmem:[%s1222_s1 + $0x60] sm:$0xff]  ;;  %v57_v32 = vld [vmem:[%s1223_s2 + $0x10] sm:$0xff] }
  0x19   :  { %831 = vmatprep.mubr.msk.f32.mxu0 %vm151_vm1, %v43_v22  ;;  %108 = vperm.xlu0 %911, %v62_v23   ;;  %v58_v31 = vld [vmem:[%s1223_s2 + $0x18] sm:$0xff]  ;;  %v48_v33 = vld [vmem:[%s1222_s1 + $0x68] sm:$0xff]  ;;  %v49_v34 = vld [vmem:[%s1222_s1 + $0x70] sm:$0xff] }
  0x1a   :  { %103 = vperm.xlu1 %912, %v61_v24   ;;  %v56_v35 = vld [vmem:[%s1223_s2 + $0x8] sm:$0xff]  ;;  %v55_v36 = vld [vmem:[%s1223_s2] sm:$0xff]  ;;  %v50_v37 = vld [vmem:[%s1222_s1 + $0x78] sm:$0xff] }
  0x1b   :  { %v380_v38 = vld [vmem:[%s1225_s4 + $0x38] sm:$0xff]  ;;  %v379_v39 = vld [vmem:[%s1225_s4 + $0x30] sm:$0xff]  ;;  %v378_v40 = vld [vmem:[%s1225_s4 + $0x28] sm:$0xff] }
  0x1c   :  { %832 = vmatmul.mubr.msk.f32.gmra.mxu0 %vm151_vm1, %v44_v25  ;;  %v377_v41 = vld [vmem:[%s1225_s4 + $0x20] sm:$0xff]  ;;  %v376_v42 = vld [vmem:[%s1225_s4 + $0x18] sm:$0xff]  ;;  %v375_v43 = vld [vmem:[%s1225_s4 + $0x10] sm:$0xff] }
  0x1d   :  { %834 = vmatprep.mubr.msk.f32.mxu0 %vm151_vm1, %v45_v26  ;;  %98 = vperm.xlu0 %911, %v60_v27   ;;  %v374_v44 = vld [vmem:[%s1225_s4 + $0x8] sm:$0xff]  ;;  %v373_v45 = vld [vmem:[%s1225_s4] sm:$0xff]  ;;  %v540_v48 = vld [vmem:[%s1227_s6 + $0x10] sm:$0xff] }
  0x1e   :  { %93 = vperm.xlu1 %912, %v59_v28   ;;  %v538_v46 = vld [vmem:[%s1227_s6] sm:$0xff]  ;;  %v539_v47 = vld [vmem:[%s1227_s6 + $0x8] sm:$0xff]  ;;  %v541_v49 = vld [vmem:[%s1227_s6 + $0x18] sm:$0xff] }
  0x1f   :  { %v664_v50 = vld [vmem:[%s1228_s7] sm:$0xff]  ;;  %v665_v51 = vld [vmem:[%s1228_s7 + $0x8] sm:$0xff]  ;;  %v666_v52 = vld [vmem:[%s1228_s7 + $0x10] sm:$0xff] }
  0x20   :  { %835 = vmatmul.mubr.msk.f32.gmra.mxu0 %vm151_vm1, %v46_v29  ;;  %v667_v53 = vld [vmem:[%s1228_s7 + $0x18] sm:$0xff]  ;;  %v701_v54 = vld [vmem:[#allocation2] sm:$0x1] }
  0x21   :  { %837 = vmatprep.mubr.msk.f32.mxu0 %vm151_vm1, %v47_v30  ;;  %88 = vperm.xlu0 %911, %v58_v31   ;;  %v365_v55 = vld [vmem:[%s1224_s3] sm:$0xff] }
  0x22   :  { %83 = vperm.xlu1 %912, %v57_v32   ;;  %875 = vmatprep.mubr.f32.mxu1 %v365_v55 }
  0x24   :  { %838 = vmatmul.mubr.msk.f32.gmra.mxu0 %vm151_vm1, %v48_v33 }
  0x25   :  { %840 = vmatprep.mubr.msk.f32.mxu0 %vm151_vm1, %v49_v34  ;;  %78 = vperm.xlu0 %911, %v56_v35  }
  0x26   :  { %73 = vperm.xlu1 %912, %v55_v36  }
  0x28   :  { %841 = vmatmul.mubr.msk.f32.gmra.mxu0 %vm151_vm1, %v50_v37 }
  0x29   :  { %418 = vperm.xlu0 %911, %v380_v38  }
  0x2a   :  { %413 = vperm.xlu1 %912, %v379_v39  }
  0x2d   :  { %408 = vperm.xlu0 %911, %v378_v40  }
  0x2e   :  { %403 = vperm.xlu1 %912, %v377_v41  }
  0x31   :  { %398 = vperm.xlu0 %911, %v376_v42  }
  0x32   :  { %393 = vperm.xlu1 %912, %v375_v43  }
  0x35   :  { %388 = vperm.xlu0 %911, %v374_v44  }
  0x36   :  { %383 = vperm.xlu1 %912, %v373_v45  }
  0x39   :  { %544 = vperm.xlu0 %911, %v538_v46  }
  0x3a   :  { %549 = vperm.xlu1 %912, %v539_v47  }
  0x3d   :  { %554 = vperm.xlu0 %911, %v540_v48  }
  0x3e   :  { %559 = vperm.xlu1 %912, %v541_v49  }
  0x41   :  { %670 = vperm.xlu0 %911, %v664_v50  }
  0x42   :  { %675 = vperm.xlu1 %912, %v665_v51  }
  0x45   :  { %680 = vperm.xlu0 %911, %v666_v52  }
  0x46   :  { %685 = vperm.xlu1 %912, %v667_v53  }
  0x49   :  { %704 = vperm.xlu0 %911, %v701_v54  }
  0x82   :  { %v149_v62 = vpop.permute.xlu0 %148 }
  0x83   :  { %v139_v0 = vpop.permute.xlu1 %138 }
  0x86   :  { %v144_v3 = vpop.permute.xlu0 %143 }
  0x87   :  { %v134_v5 = vpop.permute.xlu1 %133 }
  0x8a   :  { %v129_v8 = vpop.permute.xlu0 %128 }
  0x8b   :  { %v124_v10 = vpop.permute.xlu1 %123 }
  0x90   :  { %v119_v14 = vpop.permute.xlu0 %118 }
  0x91   :  { %v114_v19 = vpop.permute.xlu1 %113 }
  0x94   :  { %v109_v24 = vpop.permute.xlu0 %108 }
  0x95   :  { %v104_v27 = vpop.permute.xlu1 %103 }
  0x98   :  { %v99_v32 = vpop.permute.xlu0 %98 }
  0x99   :  { %v94_v35 = vpop.permute.xlu1 %93 }
  0x9c   :  { %v89_v40 = vpop.permute.xlu0 %88 }
  0x9d   :  { %v84_v43 = vpop.permute.xlu1 %83 }
  0xa0   :  { %v79_v48 = vpop.permute.xlu0 %78 }
  0xa1   :  { %v74_v51 = vpop.permute.xlu1 %73 }
  0xcc   :  { %v1169_v56 = vpop.f32.mrf.mxu0 }
  0xcd   :  { %v276_v49 = vadd.f32 %v1169_v56, %v79_v48  ;;  %v367_v56 = vld [vmem:[%s1224_s3 + $0x10] sm:$0xff] }
  0xce   :  { %v1171_v57 = vpop.f32.mrf.mxu0 }
  0xcf   :  { %v271_v52 = vadd.f32 %v1171_v57, %v74_v51  ;;  %v350_v54 = vmax.f32 %v276_v49, 0.0  ;;  %v368_v57 = vld [vmem:[%s1224_s3 + $0x18] sm:$0xff] }
  0xd0   :  { %v1173_v58 = vpop.f32.mrf.mxu0 }
  0xd1   :  { %v286_v44 = vadd.f32 %v1173_v58, %v89_v40  ;;  %v349_v55 = vmax.f32 %v271_v52, 0.0  ;;  %v366_v58 = vld [vmem:[%s1224_s3 + $0x8] sm:$0xff] }
  0xd2   :  { %v1175_v59 = vpop.f32.mrf.mxu0 }
  0xd3   :  { %v281_v46 = vadd.f32 %v1175_v59, %v84_v43  ;;  %v352_v50 = vmax.f32 %v286_v44, 0.0  ;;  %v369_v59 = vld [vmem:[%s1224_s3 + $0x20] sm:$0xff] }
  0xd4   :  { %v827_v60 = vpop.f32.mrf.mxu0 }
  0xd5   :  { %v296_v38 = vadd.f32 %v827_v60, %v99_v32  ;;  %v351_v53 = vmax.f32 %v281_v46, 0.0  ;;  %v370_v60 = vld [vmem:[%s1224_s3 + $0x28] sm:$0xff] }
  0xd6   :  { %v290_v61 = vpop.f32.mrf.mxu0  ;;  %v535_v32 = vld [vmem:[%s1226_s5 + $0x8] sm:$0xff] }
  0xd7   :  { %v291_v41 = vadd.f32 %v290_v61, %v94_v35  ;;  %v354_v45 = vmax.f32 %v296_v38, 0.0  ;;  %v371_v61 = vld [vmem:[%s1224_s3 + $0x30] sm:$0xff] }
  0xd8   :  { %v830_v63 = vpop.f32.mrf.mxu0 }
  0xd9   :  { %v306_v33 = vadd.f32 %v830_v63, %v109_v24  ;;  %v353_v47 = vmax.f32 %v291_v41, 0.0  ;;  %v534_v63 = vld [vmem:[%s1226_s5] sm:$0xff] }
  0xda   :  { %v300_v1 = vpop.f32.mrf.mxu0  ;;  %903 = vmatprep.mubr.msk.f32.mxu0 %vm562_vm2, %v534_v63 }
  0xdb   :  { %v301_v36 = vadd.f32 %v300_v1, %v104_v27  ;;  %v356_v39 = vmax.f32 %v306_v33, 0.0  ;;  %v536_v33 = vld [vmem:[%s1226_s5 + $0x10] sm:$0xff] }
  0xdc   :  { %v833_v2 = vpop.f32.mrf.mxu0 }
  0xdd   :  { %v316_v28 = vadd.f32 %v833_v2, %v119_v14  ;;  %v355_v42 = vmax.f32 %v301_v36, 0.0  ;;  %v419_v2 = vpop.permute.xlu0 %418 }
  0xde   :  { %v310_v4 = vpop.f32.mrf.mxu0 }
  0xdf   :  { %v311_v30 = vadd.f32 %v310_v4, %v114_v19  ;;  %v358_v34 = vmax.f32 %v316_v28, 0.0  ;;  %v414_v4 = vpop.permute.xlu1 %413 }
  0xe0   :  { %v836_v6 = vpop.f32.mrf.mxu0 }
  0xe1   :  { %v326_v22 = vadd.f32 %v836_v6, %v129_v8  ;;  %v357_v37 = vmax.f32 %v311_v30, 0.0 }
  0xe2   :  { %v320_v7 = vpop.f32.mrf.mxu0 }
  0xe3   :  { %v321_v25 = vadd.f32 %v320_v7, %v124_v10  ;;  %v360_v29 = vmax.f32 %v326_v22, 0.0  ;;  %v409_v7 = vpop.permute.xlu0 %408 }
  0xe4   :  { %v839_v9 = vpop.f32.mrf.mxu0 }
  0xe5   :  { %v336_v16 = vadd.f32 %v839_v9, %v139_v0  ;;  %v359_v31 = vmax.f32 %v321_v25, 0.0  ;;  %v404_v9 = vpop.permute.xlu1 %403 }
  0xe6   :  { %v330_v11 = vpop.f32.mrf.mxu0 }
  0xe7   :  { %v331_v20 = vadd.f32 %v330_v11, %v134_v5  ;;  %v362_v23 = vmax.f32 %v336_v16, 0.0  ;;  %v399_v16 = vpop.permute.xlu0 %398 }
  0xe8   :  { %v842_v12 = vpop.f32.mrf.mxu0 }
  0xe9   :  { %v346_v13 = vadd.f32 %v842_v12, %v149_v62  ;;  %v361_v26 = vmax.f32 %v331_v20, 0.0  ;;  %v372_v62 = vld [vmem:[%s1224_s3 + $0x38] sm:$0xff]  ;;  %v394_v19 = vpop.permute.xlu1 %393 }
  0xea   :  { %v340_v15 = vpop.f32.mrf.mxu0 }
  0xeb   :  { %v364_v17 = vmax.f32 %v346_v13, 0.0  ;;  %v341_v18 = vadd.f32 %v340_v15, %v144_v3  ;;  %v389_v24 = vpop.permute.xlu0 %388 }
  0xed   :  { %v363_v21 = vmax.f32 %v341_v18, 0.0  ;;  %843 = vmatprep.subr.mxu1 %v364_v17  ;;  %v384_v27 = vpop.permute.xlu1 %383 }
  0xee   :  { %844 = vmatpush3.msra.mxu1 %v364_v17 }
  0xef   :  { %845 = vmatprep.subr.mxu1 %v363_v21  ;;  %v545_v35 = vpop.permute.xlu0 %544 }
  0xf0   :  { %846 = vmatpush3.msra.mxu1 %v363_v21 }
  0xf1   :  { %847 = vmatprep.subr.mxu1 %v362_v23  ;;  %v550_v36 = vpop.permute.xlu1 %549 }
  0xf2   :  { %848 = vmatpush3.msra.mxu1 %v362_v23 }
  0xf3   :  { %849 = vmatprep.subr.mxu1 %v361_v26 }
  0xf4   :  { %850 = vmatpush3.msra.mxu1 %v361_v26 }
  0xf5   :  { %851 = vmatprep.subr.mxu1 %v360_v29  ;;  %v560_v38 = vpop.permute.xlu1 %559 }
  0xf6   :  { %852 = vmatpush3.msra.mxu1 %v360_v29 }
  0xf7   :  { %853 = vmatprep.subr.mxu1 %v359_v31 }
  0xf8   :  { %854 = vmatpush3.msra.mxu1 %v359_v31 }
  0xf9   :  { %855 = vmatprep.subr.mxu1 %v358_v34  ;;  %v676_v48 = vpop.permute.xlu1 %675 }
  0xfa   :  { %856 = vmatpush3.msra.mxu1 %v358_v34  ;;  %v537_v34 = vld [vmem:[%s1226_s5 + $0x18] sm:$0xff]  ;;  %s940_s5 = smov [#allocation3]  }
  0xfb   :  { %857 = vmatprep.subr.mxu1 %v357_v37  ;;  %s725_s15 = sshll.u32 %s940_s5, 4  ;;  %s726_s15 = int_to_ptr.vmem [resolvable:$true] %s725_s15 }
  0xfc   :  { %858 = vmatpush3.msra.mxu1 %v357_v37  ;;  %v555_v37 = vpop.permute.xlu0 %554  ;;  %s917_s16 = scalar_lea.vmem %s726_s15, 16  ;;  %s921_s17 = scalar_lea.vmem %s726_s15, 32 }
  0xfd   :  { %859 = vmatprep.subr.mxu1 %v356_v39  ;;  %p918_p0 = scmp.ne.s32.totalorder %s726_s15, %s917_s16  ;;  %p922_p1 = scmp.lt.s32.totalorder %s726_s15, %s726_s15 }
  0xfe   :  { %860 = vmatpush3.msra.mxu1 %v356_v39  ;;  %p923_p2 = scmp.lt.s32.totalorder %s921_s17, %s917_s16 }
  0xff   :  { %861 = vmatprep.subr.mxu1 %v355_v42 }
 0x100   :  { %862 = vmatpush3.msra.mxu1 %v355_v42  ;;  %v671_v43 = vpop.permute.xlu0 %670  ;;  %p924_p3 = por %p923_p2, %p922_p1 }
 0x101   :  { %863 = vmatprep.subr.mxu1 %v354_v45 }
 0x102   :  { %864 = vmatpush3.msra.mxu1 %v354_v45  ;;  %p925_p4 = pnand %p924_p3, %p918_p0 }
 0x103   :  { %865 = vmatprep.subr.mxu1 %v353_v47 }
 0x104   :  { %866 = vmatpush3.msra.mxu1 %v353_v47 }
 0x105   :  { %867 = vmatprep.subr.mxu1 %v352_v50 }
 0x106   :  { %868 = vmatpush3.msra.mxu1 %v352_v50 }
 0x107   :  { %869 = vmatprep.subr.mxu1 %v351_v53 }
 0x108   :  { %870 = vmatpush3.msra.mxu1 %v351_v53 }
 0x109   :  { %871 = vmatprep.subr.mxu1 %v350_v54 }
 0x10a   :  { %872 = vmatpush3.msra.mxu1 %v350_v54 }
 0x10b   :  { %873 = vmatprep.subr.mxu1 %v349_v55 }
 0x10c   :  { %874 = vmatpush3.msra.mxu1 %v349_v55  ;;  %v681_v55 = vpop.permute.xlu0 %680 }
 0x10d   :  { %876 = vmatmul.mubr.f32.vlgmr.msra.gmra.mxu1 %v366_v58 }
 0x10e   :  { %878 = vmatprep.mubr.f32.mxu1 %v367_v56 }
 0x111   :  { %879 = vmatmul.mubr.f32.gmra.mxu1 %v368_v57  ;;  %v686_v57 = vpop.permute.xlu1 %685 }
 0x112   :  { %881 = vmatprep.mubr.f32.mxu1 %v369_v59 }
 0x115   :  { %882 = vmatmul.mubr.f32.gmra.mxu1 %v370_v60 }
 0x116   :  { %884 = vmatprep.mubr.f32.mxu1 %v371_v61  ;;  %v707_v61 = vlaneseq }
 0x119   :  { %885 = vmatmul.mubr.f32.gmra.mxu1 %v372_v62 }
 0x1cd   :  { %v877_v0 = vpop.f32.mrf.mxu1 }
 0x1ce   :  { %v493_v25 = vadd.f32 %v877_v0, %v389_v24  ;;  %v708_v0 = vshrl.u32 %v707_v61, 7 }
 0x1cf   :  { %v487_v1 = vpop.f32.mrf.mxu1 }
 0x1d0   :  { %v488_v28 = vadd.f32 %v487_v1, %v384_v27  ;;  %v527_v30 = vmax.f32 %v493_v25, 0.0 }
 0x1d1   :  { %v880_v3 = vpop.f32.mrf.mxu1 }
 0x1d2   :  { %v503_v20 = vadd.f32 %v880_v3, %v399_v16  ;;  %v526_v31 = vmax.f32 %v488_v28, 0.0  ;;  %v709_v3 = vsub.s32 0, %v708_v0 }
 0x1d3   :  { %v497_v5 = vpop.f32.mrf.mxu1 }
 0x1d4   :  { %v498_v22 = vadd.f32 %v497_v5, %v394_v19  ;;  %v529_v26 = vmax.f32 %v503_v20, 0.0  ;;  %v705_v5 = vpop.permute.xlu0 %704 }
 0x1d5   :  { %v883_v6 = vpop.f32.mrf.mxu1 }
 0x1d6   :  { %v513_v13 = vadd.f32 %v883_v6, %v409_v7  ;;  %v528_v29 = vmax.f32 %v498_v22, 0.0  ;;  %v710_v7 = vrot.slane %v705_v5, %v709_v3 }
 0x1d7   :  { %v507_v8 = vpop.f32.mrf.mxu1 }
 0x1d8   :  { %v508_v17 = vadd.f32 %v507_v8, %v404_v9  ;;  %v531_v21 = vmax.f32 %v513_v13, 0.0 }
 0x1d9   :  { %v886_v10 = vpop.f32.mrf.mxu1 }
 0x1da   :  { %v523_v11 = vadd.f32 %v886_v10, %v419_v2  ;;  %v530_v23 = vmax.f32 %v508_v17, 0.0 }
 0x1db   :  { %v517_v12 = vpop.f32.mrf.mxu1 }
 0x1dc   :  { %v533_v14 = vmax.f32 %v523_v11, 0.0  ;;  %v518_v15 = vadd.f32 %v517_v12, %v414_v4 }
 0x1de   :  { %v532_v18 = vmax.f32 %v518_v15, 0.0  ;;  %887 = vmatprep.subr.mxu0 %v533_v14 }
 0x1df   :  { %888 = vmatpush3.msra.mxu0 %v533_v14 }
 0x1e0   :  { %889 = vmatprep.subr.mxu0 %v532_v18 }
 0x1e1   :  { %890 = vmatpush3.msra.mxu0 %v532_v18 }
 0x1e2   :  { %891 = vmatprep.subr.mxu0 %v531_v21 }
 0x1e3   :  { %892 = vmatpush3.msra.mxu0 %v531_v21 }
 0x1e4   :  { %893 = vmatprep.subr.mxu0 %v530_v23 }
 0x1e5   :  { %894 = vmatpush3.msra.mxu0 %v530_v23 }
 0x1e6   :  { %895 = vmatprep.subr.mxu0 %v529_v26 }
 0x1e7   :  { %896 = vmatpush3.msra.mxu0 %v529_v26 }
 0x1e8   :  { %897 = vmatprep.subr.mxu0 %v528_v29 }
 0x1e9   :  { %898 = vmatpush3.msra.mxu0 %v528_v29 }
 0x1ea   :  { %899 = vmatprep.subr.mxu0 %v527_v30 }
 0x1eb   :  { %900 = vmatpush3.msra.mxu0 %v527_v30 }
 0x1ec   :  { %901 = vmatprep.subr.mxu0 %v526_v31 }
 0x1ed   :  { %902 = vmatpush3.msra.mxu0 %v526_v31 }
 0x1ee   :  { %904 = vmatmul.mubr.msk.f32.vlgmr.msra.gmra.mxu0 %vm562_vm2, %v535_v32 }
 0x1ef   :  { %906 = vmatprep.mubr.msk.f32.mxu0 %vm562_vm2, %v536_v33 }
 0x1f2   :  { %907 = vmatmul.mubr.msk.f32.gmra.mxu0 %vm562_vm2, %v537_v34 }
 0x2ae   :  { %v905_v39 = vpop.f32.mrf.mxu0 }
 0x2af   :  { %v647_v40 = vadd.f32 %v905_v39, %v550_v36 }
 0x2b0   :  { %v641_v41 = vpop.f32.mrf.mxu0 }
 0x2b1   :  { %v642_v42 = vadd.f32 %v641_v41, %v545_v35  ;;  %v661_v45 = vmax.f32 %v647_v40, 0.0 }
 0x2b2   :  { %v908_v44 = vpop.f32.mrf.mxu0 }
 0x2b3   :  { %v660_v46 = vmax.f32 %v642_v42, 0.0  ;;  %v657_v47 = vadd.f32 %v908_v44, %v560_v38  ;;  %v689_v52 = vmul.f32 %v676_v48, %v661_v45 }
 0x2b4   :  { %v651_v49 = vpop.f32.mrf.mxu0 }
 0x2b5   :  { %v688_v50 = vmul.f32 %v671_v43, %v660_v46  ;;  %v652_v51 = vadd.f32 %v651_v49, %v555_v37  ;;  %v663_v53 = vmax.f32 %v657_v47, 0.0 }
 0x2b7   :  { %v662_v54 = vmax.f32 %v652_v51, 0.0  ;;  %v692_v58 = vadd.f32 %v689_v52, %v688_v50  ;;  %v691_v59 = vmul.f32 %v686_v57, %v663_v53 }
 0x2b9   :  { %v690_v56 = vmul.f32 %v681_v55, %v662_v54 }
 0x2bb   :  { %v693_v60 = vadd.f32 %v692_v58, %v690_v56 }
 0x2bd   :  { %v694_v62 = vadd.f32 %v693_v60, %v691_v59 }
 0x2bf   :  { %v695_v63 = vrot.slane %v694_v62, 4 }
 0x2c1   :  { %v696_v1 = vadd.f32 %v695_v63, %v694_v62 }
 0x2c3   :  { %v697_v2 = vrot.slane %v696_v1, 2 }
 0x2c5   :  { %v698_v4 = vadd.f32 %v697_v2, %v696_v1 }
 0x2c7   :  { %v699_v6 = vrot.slane %v698_v4, 1 }
 0x2c9   :  { %v700_v8 = vadd.f32 %v699_v6, %v698_v4 }
 0x2cb   :  { %v711_v9 = vadd.f32 %v710_v7, %v700_v8 }
 0x2cd   :  { %v754_v10 = vmul.f32 -1.442695, %v711_v9 }
 0x2cf   :  { %913 = vpow2.f32 %v754_v10 }
 0x2dc   :  { %v914_v11 = vpop.eup %913 }
 0x2dd   :  { %v715_v12 = vadd.f32 1.0, %v914_v11 }
 0x2df   :  { %915 = vrcp.f32 %v715_v12 }
 0x2ec   :  { %v916_v13 = vpop.eup %915 }
 0x2ed   :  { %718 = vst [vmem:[#allocation3] sm:$0x1] %v916_v13 }
 0x2ee   :  { %928 = shalt.err (!%p925_p4)
}
 0x2ef   :  { %728 = dma.vmem_to_hbm [thread:$0]  %s726_s15, 16, %s1230_s9, [#allocation4]  }
 0x2f0   :  { %937 = dma.done.wait [#allocation4], 16  }
 0x2f1   :  { %938 = vsyncadd [#allocation4], 4294967280 }
 0x2f2   :  { %732 = vsyncpa [#allocation4], 1 }

</bundles_post_ra>
